<compile_context>
chip_gen: v7x
topology: tpu7x:2x2x1
jax: 0.10.0
libtpu: 0.0.40
codegen_flags: <defaults>
</compile_context>

<pallas_src>
import functools

import jax
import jax.numpy as jnp
from jax.experimental import pallas as pl
from jax.experimental.pallas import tpu as pltpu

LRELU_SLOPE_GAT = 0.2      # GATConv internal LeakyReLU negative_slope
LRELU_SLOPE_ACT = 0.01     # nn.LeakyReLU default negative_slope
BN_EPS = 1e-5              # nn.BatchNorm1d default eps


# ----------------------------------------------------------------------------
# Generation-aware sizing
# ----------------------------------------------------------------------------
def _round_up(v, m):
    return ((v + m - 1) // m) * m


def _chip_caps():
    """VMEM budgets / feature gates per TPU generation (device_kind based)."""
    kind = ""
    try:
        kind = jax.devices()[0].device_kind.lower()
    except Exception:
        pass
    if "v2" in kind or "v3" in kind:      # 16 MiB VMEM
        return dict(tile_budget=6 << 20, vmem_cap=14 << 20, max_tile_rows=256,
                    bf16_exp=False, multi_tc=False)
    if "v4" in kind or "v5" in kind:      # 128 MiB VMEM, no bf16 EUP (v5e)
        return dict(tile_budget=56 << 20, vmem_cap=100 << 20, max_tile_rows=1024,
                    bf16_exp=False, multi_tc=False)
    if "v6" in kind:                      # 128 MiB VMEM, bf16 EUP
        return dict(tile_budget=56 << 20, vmem_cap=100 << 20, max_tile_rows=1024,
                    bf16_exp=True, multi_tc=False)
    # v7x / unknown: assume the conservative 64 MiB-per-TC VMEM and 2 TCs.
    return dict(tile_budget=24 << 20, vmem_cap=50 << 20, max_tile_rows=512,
                bf16_exp=True, multi_tc=True)


def _gat_tile_bytes(tr, n_pad, fo_pad):
    nn = tr * n_pad
    per_tile = nn * (4 + 2)              # f32 e (reused for e-m) + bf16 p
    per_tile += 2 * nn * 2               # double-buffered bf16 mask row tile
    per_tile += 2 * tr * 4               # a_dst tile (x2 buffers)
    per_tile += 2 * tr * fo_pad * 4      # output tile (x2 buffers)
    per_tile += 2 * 2 * fo_pad * 4       # stats tile (x2 buffers)
    resident = 2 * n_pad * fo_pad * 2    # bf16 h (x2 buffers)
    resident += 2 * n_pad * 4            # a_src row (x2)
    resident += 2 * fo_pad * 4           # bias (x2)
    return per_tile + resident


def _row_tiling(n, fo_pad, caps):
    """Pick (n_pad, tile_rows) so the per-tile footprint fits the chip budget."""
    n8 = _round_up(max(n, 8), 8)
    tr = _round_up(min(caps["max_tile_rows"], n8), 8)
    while tr > 32 and _gat_tile_bytes(tr, _round_up(n8, tr), fo_pad) > caps["tile_budget"]:
        tr = _round_up(tr // 2, 8)
    # On multi-TC chips (v7x) make sure the "parallel" grid axis has >= 2
    # steps so both TensorCores do work (skip for trivially small graphs).
    if caps["multi_tc"] and n8 > 64 and tr >= n8:
        tr = _round_up((n8 + 1) // 2, 8)
    n_pad = _round_up(n8, tr)
    return n_pad, tr


def _gat_vmem_limit(tr, n_pad, fo_pad, caps):
    est = _gat_tile_bytes(tr, n_pad, fo_pad)
    return int(min(max(int(est * 1.25) + (4 << 20), 20 << 20), caps["vmem_cap"]))


# ----------------------------------------------------------------------------
# Kernel 1: row-tiled GAT attention + aggregation + activation (+ BN partials)
# ----------------------------------------------------------------------------
def _gat_row_kernel(h_ref, adst_ref, asrc_ref, b_ref, mask_ref,
                    o_ref, stats_ref, *, act, n_real, tile_rows, ones_col,
                    exp_bf16):
    # e[r, j] = LeakyReLU(a_dst[row r] + a_src[j] + mask_bias[r, j]).
    # mask_bias is 0 for edge j -> r (incl. self loops) and -1e30 otherwise,
    # so masked logits underflow to exactly 0 after the exp — no second mask
    # pass and no compare/select chain on the N^2 path.
    e = adst_ref[...] + asrc_ref[...] + mask_ref[...].astype(jnp.float32)
    e = jnp.maximum(e, LRELU_SLOPE_GAT * e)            # LeakyReLU (slope < 1)

    m = jnp.max(e, axis=-1, keepdims=True)
    em = e - m
    if exp_bf16:
        p = jnp.exp(em.astype(jnp.bfloat16))           # bf16 EUP path (v6e+)
    else:
        p = jnp.exp(em).astype(jnp.bfloat16)           # f32 exp (v5e and older)

    # h carries a ones-column at `ones_col`, so agg[:, ones_col] is the
    # softmax denominator, accumulated in f32 on the MXU.
    agg = jnp.dot(p, h_ref[...], preferred_element_type=jnp.float32)  # [TR,Fo_pad]
    denom = agg[:, ones_col:ones_col + 1]                             # [TR, 1]
    out = agg * pl.reciprocal(denom, approx=True) + b_ref[...]

    # Activation (nn.Tanh for the last GAT block, nn.LeakyReLU otherwise).
    if act == "tanh":
        out = jnp.tanh(out)
    else:
        out = jnp.maximum(out, LRELU_SLOPE_ACT * out)

    o_ref[...] = out

    # Per-tile partial sums for BatchNorm1d (padded rows excluded); the
    # normalization itself is folded into the next consumer's weights in the
    # wrapper, so no second pass over [N, Fo] is needed.
    row = (jax.lax.broadcasted_iota(jnp.int32, (tile_rows, 1), 0)
           + pl.program_id(0) * tile_rows)
    valid = (row < n_real).astype(jnp.float32)                        # [TR, 1]
    ov = out * valid
    stats_ref[0, 0:1, :] = jnp.sum(ov, axis=0, keepdims=True)         # sum
    stats_ref[0, 1:2, :] = jnp.sum(ov * out, axis=0, keepdims=True)   # sum sq


def gat_block(h_bf, a_dst, a_src_row, bias, mask_bias, *, act, n_real,
              tile_rows, ones_col, exp_bf16, vmem_limit):
    n_pad, fo_pad = h_bf.shape
    tr = tile_rows
    n_tiles = n_pad // tr

    # TODO(synk): n_real / tile geometry are baked in statically, so every
    # distinct graph size recompiles; move n_real to an SMEM scalar via
    # PrefetchScalarGridSpec if graph sizes vary a lot.
    kernel = functools.partial(_gat_row_kernel, act=act, n_real=n_real,
                               tile_rows=tr, ones_col=ones_col,
                               exp_bf16=exp_bf16)
    out, stats = pl.pallas_call(
        kernel,
        grid=(n_tiles,),
        in_specs=[
            pl.BlockSpec((n_pad, fo_pad), lambda i: (0, 0)),  # h (bf16, invariant)
            pl.BlockSpec((tr, 1), lambda i: (i, 0)),          # a_dst row tile
            pl.BlockSpec((1, n_pad), lambda i: (0, 0)),       # a_src row (invariant)
            pl.BlockSpec((1, fo_pad), lambda i: (0, 0)),      # bias (invariant)
            pl.BlockSpec((tr, n_pad), lambda i: (i, 0)),      # additive mask tile
        ],
        out_specs=[
            pl.BlockSpec((tr, fo_pad), lambda i: (i, 0)),
            pl.BlockSpec((1, 2, fo_pad), lambda i: (i, 0, 0)),
        ],
        out_shape=(
            jax.ShapeDtypeStruct((n_pad, fo_pad), jnp.float32),
            jax.ShapeDtypeStruct((n_tiles, 2, fo_pad), jnp.float32),
        ),
        compiler_params=pltpu.CompilerParams(
            dimension_semantics=("parallel",),
            vmem_limit_bytes=vmem_limit,
        ),
    )(h_bf, a_dst, a_src_row, bias, mask_bias)
    return out, stats


def _bn_from_partials(stats, n_real):
    """Training-mode BatchNorm1d stats (gamma=1, beta=0) from tile partials."""
    s = jnp.sum(stats[:, 0, :], axis=0)
    ss = jnp.sum(stats[:, 1, :], axis=0)
    mu = s / n_real
    var = jnp.maximum(ss / n_real - mu * mu, 0.0)
    rstd = jax.lax.rsqrt(var + BN_EPS)
    return mu, rstd


# ----------------------------------------------------------------------------
# Kernel 2: scatter_mean pooling + concat(graph_ft) + MLP head
#   concat is folded into the first Linear by splitting its weight:
#   cat([pooled, gft]) @ W1 == pooled @ W1a + gft @ W1b
# ----------------------------------------------------------------------------
def _pool_mlp_kernel(x_ref, onehot_ref, invcnt_ref, gft_ref,
                     w1a_ref, w1b_ref, b1_ref, *rest):
    o_ref = rest[-1]
    wb = rest[:-1]

    # scatter_mean as a one-hot matmul; one-hot streamed as bf16 (0/1 exact).
    pooled = jnp.dot(onehot_ref[...].astype(jnp.float32), x_ref[...],
                     preferred_element_type=jnp.float32) * invcnt_ref[...]

    h = (jnp.dot(pooled, w1a_ref[...], preferred_element_type=jnp.float32)
         + jnp.dot(gft_ref[...], w1b_ref[...], preferred_element_type=jnp.float32)
         + b1_ref[...])
    h = jnp.maximum(h, LRELU_SLOPE_ACT * h)          # LeakyReLU after first Linear

    n_rest = len(wb) // 2
    for k in range(n_rest):
        w = wb[2 * k][...]
        b = wb[2 * k + 1][...]
        h = jnp.dot(h, w, preferred_element_type=jnp.float32) + b
        if k != n_rest - 1:                          # no activation after last Linear
            h = jnp.maximum(h, LRELU_SLOPE_ACT * h)

    o_ref[...] = h


def pool_mlp(x, onehot, inv_counts, graph_ft, mlp_params, vmem_cap):
    (w1a, w1b, b1), rest = mlp_params[0], mlp_params[1:]
    flat_rest = []
    for (w, b) in rest:
        flat_rest.extend([w, b])
    n_out = rest[-1][0].shape[1] if rest else w1a.shape[1]
    bsz = onehot.shape[0]
    args = (x, onehot, inv_counts, graph_ft, w1a, w1b, b1, *flat_rest)
    # TODO(synk): for very large graphs the [B, N_pad] one-hot / embedding
    # should be row-tiled instead of held whole in VMEM.
    vmem_est = sum(int(a.size) * a.dtype.itemsize for a in args) * 2 + (2 << 20)
    vmem = pl.BlockSpec(memory_space=pltpu.MemorySpace.VMEM)
    return pl.pallas_call(
        _pool_mlp_kernel,
        out_shape=jax.ShapeDtypeStruct((bsz, n_out), jnp.float32),
        in_specs=[vmem] * len(args),
        out_specs=vmem,
        compiler_params=pltpu.CompilerParams(
            vmem_limit_bytes=int(min(max(vmem_est, 16 << 20), vmem_cap))),
    )(*args)


# ----------------------------------------------------------------------------
# GaNN forward (O(N*F) glue in plain JAX, O(N^2) hot path in the kernel above)
# ----------------------------------------------------------------------------
class GaNNPallas:
    def __init__(self, mlp_input_size, hidden_size, conv_size, graph_ft_size,
                 batchnorm=True, seed=0):
        self.hidden_size = list(hidden_size)
        self.conv_size = list(conv_size)
        self.batchnorm = batchnorm
        self.graph_ft_size = graph_ft_size
        key = jax.random.PRNGKey(seed)

        # GATConv parameters (heads=1): W [Fi,Fo], att_src/att_dst [1,Fo], bias [1,Fo]
        self.gat_params = []
        for i in range(len(self.conv_size) - 1):
            fi, fo = self.conv_size[i], self.conv_size[i + 1]
            key, k1, k2, k3 = jax.random.split(key, 4)
            w = 0.2 * jax.random.normal(k1, (fi, fo), jnp.float32)
            a_src = 0.2 * jax.random.normal(k2, (1, fo), jnp.float32)
            a_dst = 0.2 * jax.random.normal(k3, (1, fo), jnp.float32)
            b = jnp.zeros((1, fo), jnp.float32)
            self.gat_params.append((w, a_src, a_dst, b))

        # MLP parameters; first Linear split into (graph-embedding part, graph-ft part)
        pooled_dim = self.conv_size[-1]
        assert mlp_input_size == pooled_dim + graph_ft_size
        self.mlp_params = []
        key, k1, k2 = jax.random.split(key, 3)
        w1 = 0.2 * jax.random.normal(k1, (mlp_input_size, self.hidden_size[0]),
                                     jnp.float32)
        b1 = 0.05 * jax.random.normal(k2, (1, self.hidden_size[0]), jnp.float32)
        self.mlp_params.append((w1[:pooled_dim], w1[pooled_dim:], b1))
        for i in range(1, len(self.hidden_size)):
            key, k1, k2 = jax.random.split(key, 3)
            w = 0.2 * jax.random.normal(
                k1, (self.hidden_size[i - 1], self.hidden_size[i]), jnp.float32)
            b = 0.05 * jax.random.normal(k2, (1, self.hidden_size[i]), jnp.float32)
            self.mlp_params.append((w, b))

    def __call__(self, x, edge_index, graph_ft, batch):
        n = x.shape[0]
        num_graphs = graph_ft.shape[0]
        caps = _chip_caps()

        fo_pad_max = _round_up(max(self.conv_size[1:]) + 1, 128)
        n_pad, tr = _row_tiling(n, fo_pad_max, caps)
        vmem_limit = _gat_vmem_limit(tr, n_pad, fo_pad_max, caps)

        x_pad = jnp.pad(x.astype(jnp.float32), ((0, n_pad - n), (0, 0)))

        # Dense additive attention mask with self loops: 0 where edge j->i
        # (or i == j for real nodes), -1e30 otherwise, streamed as bf16 row
        # tiles.  Padded rows/cols stay fully masked so padded nodes never
        # feed real ones.
        # TODO(synk): a sparse/gather formulation would be needed for very
        # large N; the dense O(N^2) mask mirrors the reference semantics.
        adj = jnp.zeros((n_pad, n_pad), jnp.bool_)
        adj = adj.at[edge_index[1], edge_index[0]].set(True)
        adj = adj.at[jnp.arange(n), jnp.arange(n)].set(True)
        mask_bias = jnp.where(adj, 0.0, -1e30).astype(jnp.bfloat16)

        # scatter_mean as a one-hot matmul; padded nodes map to graph -1.
        batch_pad = jnp.pad(batch, (0, n_pad - n), constant_values=-1)
        onehot_f = (batch_pad[None, :] ==
                    jnp.arange(num_graphs)[:, None]).astype(jnp.float32)
        counts = jnp.maximum(jnp.sum(onehot_f, axis=1, keepdims=True), 1.0)
        inv_counts = 1.0 / counts
        onehot = onehot_f.astype(jnp.bfloat16)

        n_gat = len(self.gat_params)
        h_in = x_pad
        fold = None   # (mu, rstd) of the previous layer's BN, folded forward
        for i, (w, att_src, att_dst, b) in enumerate(self.gat_params):
            fo = w.shape[1]
            fo_pad = _round_up(fo + 1, 128)
            if fold is None:
                w_eff = w
                shift = jnp.zeros((1, fo), jnp.float32)
            else:
                mu, rstd = fold
                w_eff = rstd[:, None] * w
                shift = (-(mu * rstd))[None, :] @ w

            # O(N*F) per-layer glue, hoisted out of the N^2 kernel:
            # transformed features and per-node attention logits.
            hw = h_in @ w_eff + shift                      # [n_pad, fo] f32
            a_src = hw @ att_src.T                         # [n_pad, 1]
            a_dst = hw @ att_dst.T                         # [n_pad, 1]

            # Lane-dense bf16 copy of hw with a trailing ones-column: the
            # ones column turns the aggregation matmul into "agg | sum(p)",
            # giving the softmax denominator in f32 straight off the MXU.
            hk = jnp.zeros((n_pad, fo_pad), jnp.float32)
            hk = hk.at[:, :fo].set(hw).at[:, fo].set(1.0)
            hk = hk.astype(jnp.bfloat16)
            b_pad = jnp.zeros((1, fo_pad), jnp.float32).at[:, :fo].set(b)

            act = "tanh" if i == n_gat - 1 else "leaky_relu"
            out_pad, stats = gat_block(
                hk, a_dst, a_src.T, b_pad, mask_bias,
                act=act, n_real=n, tile_rows=tr, ones_col=fo,
                exp_bf16=caps["bf16_exp"], vmem_limit=vmem_limit)

            h_in = out_pad[:, :fo]
            fold = (_bn_from_partials(stats[:, :, :fo], n)
                    if self.batchnorm else None)

        # Fold the final BatchNorm into the first MLP Linear (affine per
        # feature commutes with the scatter_mean).
        w1a0, w1b, b10 = self.mlp_params[0]
        if self.batchnorm and fold is not None:
            mu, rstd = fold
            w1a = rstd[:, None] * w1a0
            b1 = b10 + (-(mu * rstd))[None, :] @ w1a0
        else:
            w1a, b1 = w1a0, b10
        mlp = [(w1a, w1b, b1)] + list(self.mlp_params[1:])

        return pool_mlp(h_in, onehot, inv_counts, graph_ft, mlp,
                        caps["vmem_cap"])


# ----------------------------------------------------------------------------
# Pure-JAX reference (f32 everywhere) for a loose correctness check
# ----------------------------------------------------------------------------
def _reference(model, x, edge_index, graph_ft, batch):
    n = x.shape[0]
    adj = jnp.zeros((n, n), jnp.float32)
    adj = adj.at[edge_index[1], edge_index[0]].set(1.0)
    adj = adj.at[jnp.arange(n), jnp.arange(n)].set(1.0)
    h = x
    n_gat = len(model.gat_params)
    for i, (w, asrc, adst, b) in enumerate(model.gat_params):
        hw = h @ w
        s = hw @ asrc.T
        d = hw @ adst.T
        e = d + s.T
        e = jnp.where(e > 0, e, LRELU_SLOPE_GAT * e)
        e = jnp.where(adj > 0.5, e, -1e30)
        e = e - e.max(axis=1, keepdims=True)
        p = jnp.exp(e) * (adj > 0.5)
        alpha = p / p.sum(axis=1, keepdims=True)
        out = alpha @ hw + b
        out = jnp.tanh(out) if i == n_gat - 1 else jnp.where(
            out > 0, out, LRELU_SLOPE_ACT * out)
        if model.batchnorm:
            mu = out.mean(0, keepdims=True)
            var = ((out - mu) ** 2).mean(0, keepdims=True)
            out = (out - mu) / jnp.sqrt(var + BN_EPS)
        h = out
    num_graphs = graph_ft.shape[0]
    onehot = (batch[None, :] == jnp.arange(num_graphs)[:, None]).astype(jnp.float32)
    pooled = (onehot @ h) / jnp.maximum(onehot.sum(1, keepdims=True), 1.0)
    z = jnp.concatenate([pooled, graph_ft], axis=1)
    w1a, w1b, b1 = model.mlp_params[0]
    z = z @ jnp.concatenate([w1a, w1b], axis=0) + b1
    z = jnp.where(z > 0, z, LRELU_SLOPE_ACT * z)
    rest = model.mlp_params[1:]
    for k, (w, b) in enumerate(rest):
        z = z @ w + b
        if k != len(rest) - 1:
            z = jnp.where(z > 0, z, LRELU_SLOPE_ACT * z)
    return z


if __name__ == "__main__":
    # Small synthetic graph batch: 2 graphs of 8 nodes each (N=16).
    key = jax.random.PRNGKey(0)
    k_x, k_g = jax.random.split(key)

    N, B = 16, 2
    F_IN, GFT = 4, 3
    conv_size = [F_IN, 16, 8]
    hidden_size = [32, 16, 4]
    mlp_input_size = conv_size[-1] + GFT

    x = jax.random.normal(k_x, (N, F_IN), jnp.float32)
    graph_ft = jax.random.normal(k_g, (B, GFT), jnp.float32)
    batch = jnp.concatenate([jnp.zeros(8, jnp.int32), jnp.ones(8, jnp.int32)])

    # ring edges (both directions) within each graph of 8 nodes
    src, dst = [], []
    for g in range(B):
        base = g * 8
        for i in range(8):
            a, b = base + i, base + (i + 1) % 8
            src += [a, b]
            dst += [b, a]
    edge_index = jnp.array([src, dst], jnp.int32)

    model = GaNNPallas(mlp_input_size, hidden_size, conv_size, GFT,
                       batchnorm=True, seed=0)
    out = model(x, edge_index, graph_ft, batch)
    out = jax.block_until_ready(out)

    assert out.shape == (B, hidden_size[-1])
    assert bool(jnp.all(jnp.isfinite(out)))

    # Loose tolerance: kernel uses bf16 MXU operands, (possibly) bf16 exp and
    # an approximate reciprocal; reference is pure f32.
    ref = _reference(model, x, edge_index, graph_ft, batch)
    max_diff = float(jnp.max(jnp.abs(out - ref)))
    assert max_diff < 1.5e-1, f"mismatch vs reference: {max_diff}"

    print("KERNEL_OK")
</pallas_src>

<mosaic_0001>
module attributes {stable_mosaic.version = 11 : i64} {
  func.func @_gat_row_kernel(%arg0: i32, %arg1: memref<16x128xbf16, #tpu.memory_space<vmem>>, %arg2: memref<16x1xf32, #tpu.memory_space<vmem>>, %arg3: memref<1x16xf32, #tpu.memory_space<vmem>>, %arg4: memref<1x128xf32, #tpu.memory_space<vmem>>, %arg5: memref<16x16xbf16, #tpu.memory_space<vmem>>, %arg6: memref<16x128xf32, #tpu.memory_space<vmem>>, %arg7: memref<1x2x128xf32, #tpu.memory_space<vmem>>) attributes {dimension_semantics = [#tpu.dimension_semantics<parallel>], iteration_bounds = array<i64: 1>, scalar_prefetch = 0 : i64, scratch_operands = 0 : i64, tpu.core_type = #tpu.core_type<tc>, window_params = [{pipeline_mode = #tpu.pipeline_mode<synchronous>, transform_indices = @transform_0, window_bounds = array<i64: 16, 128>}, {transform_indices = @transform_1, window_bounds = array<i64: 16, 1>}, {pipeline_mode = #tpu.pipeline_mode<synchronous>, transform_indices = @transform_2, window_bounds = array<i64: 1, 16>}, {pipeline_mode = #tpu.pipeline_mode<synchronous>, transform_indices = @transform_3, window_bounds = array<i64: 1, 128>}, {transform_indices = @transform_4, window_bounds = array<i64: 16, 16>}, {transform_indices = @transform_5, window_bounds = array<i64: 16, 128>}, {transform_indices = @transform_6, window_bounds = array<i64: 1, 2, 128>}]} {
    %c0 = arith.constant 0 : index
    %c0_0 = arith.constant 0 : index
    %0 = vector.load %arg2[%c0, %c0_0] : memref<16x1xf32, #tpu.memory_space<vmem>>, vector<16x1xf32>
    %c0_1 = arith.constant 0 : index
    %c0_2 = arith.constant 0 : index
    %1 = vector.load %arg3[%c0_1, %c0_2] : memref<1x16xf32, #tpu.memory_space<vmem>>, vector<1x16xf32>
    %2 = vector.broadcast %0 : vector<16x1xf32> to vector<16x16xf32>
    %3 = vector.broadcast %1 : vector<1x16xf32> to vector<16x16xf32>
    %4 = arith.addf %2, %3 : vector<16x16xf32>
    %c0_3 = arith.constant 0 : index
    %c0_4 = arith.constant 0 : index
    %5 = vector.load %arg5[%c0_3, %c0_4] : memref<16x16xbf16, #tpu.memory_space<vmem>>, vector<16x16xbf16>
    %6 = arith.extf %5 : vector<16x16xbf16> to vector<16x16xf32>
    %7 = arith.addf %4, %6 : vector<16x16xf32>
    %cst = arith.constant 2.000000e-01 : f32
    %8 = vector.broadcast %cst : f32 to vector<16x16xf32>
    %9 = arith.mulf %8, %7 : vector<16x16xf32>
    %10 = arith.maximumf %7, %9 : vector<16x16xf32>
    %cst_5 = arith.constant dense<0xFF800000> : vector<16xf32>
    %11 = vector.multi_reduction <maximumf>, %10, %cst_5 [1] : vector<16x16xf32> to vector<16xf32>
    %12 = vector.shape_cast %11 : vector<16xf32> to vector<16x1xf32>
    %13 = vector.broadcast %12 : vector<16x1xf32> to vector<16x16xf32>
    %14 = arith.subf %10, %13 : vector<16x16xf32>
    %15 = arith.truncf %14 : vector<16x16xf32> to vector<16x16xbf16>
    %16 = math.exp %15 : vector<16x16xbf16>
    %c0_6 = arith.constant 0 : index
    %c0_7 = arith.constant 0 : index
    %17 = vector.load %arg1[%c0_6, %c0_7] : memref<16x128xbf16, #tpu.memory_space<vmem>>, vector<16x128xbf16>
    %cst_8 = arith.constant dense<0.000000e+00> : vector<16x128xf32>
    %18 = tpu.matmul %16, %17, %cst_8 {dimension_numbers = #tpu.dot_dimension_numbers<[1], [0], [0], [1], [0, 0, 1, 1], [], []>} : vector<16x16xbf16>, vector<16x128xbf16>, vector<16x128xf32> -> vector<16x128xf32>
    %19 = vector.extract_strided_slice %18 {offsets = [0, 16], sizes = [16, 1], strides = [1, 1]} : vector<16x128xf32> to vector<16x1xf32>
    %20 = tpu.reciprocal %19 {approx = true} : vector<16x1xf32> -> vector<16x1xf32>
    %21 = vector.broadcast %20 : vector<16x1xf32> to vector<16x128xf32>
    %22 = arith.mulf %18, %21 : vector<16x128xf32>
    %c0_9 = arith.constant 0 : index
    %c0_10 = arith.constant 0 : index
    %23 = vector.load %arg4[%c0_9, %c0_10] : memref<1x128xf32, #tpu.memory_space<vmem>>, vector<1x128xf32>
    %24 = vector.broadcast %23 : vector<1x128xf32> to vector<16x128xf32>
    %25 = arith.addf %22, %24 : vector<16x128xf32>
    %cst_11 = arith.constant 0.00999999977 : f32
    %26 = vector.broadcast %cst_11 : f32 to vector<16x128xf32>
    %27 = arith.mulf %26, %25 : vector<16x128xf32>
    %28 = arith.maximumf %25, %27 : vector<16x128xf32>
    %c0_12 = arith.constant 0 : index
    %c0_13 = arith.constant 0 : index
    %29 = vector.load %arg6[%c0_12, %c0_13] : memref<16x128xf32, #tpu.memory_space<vmem>>, vector<16x128xf32>
    tpu.vector_store %arg6[%c0_12, %c0_13], %28 {strides = array<i32>} : memref<16x128xf32, #tpu.memory_space<vmem>>, vector<16x128xf32>,
    %30 = tpu.iota {dimensions = array<i32: 0>} : vector<16x1xi32>
    %c16_i32 = arith.constant 16 : i32
    %31 = arith.muli %arg0, %c16_i32 : i32
    %32 = vector.broadcast %31 : i32 to vector<16x1xi32>
    %33 = arith.addi %30, %32 : vector<16x1xi32>
    %c16_i32_14 = arith.constant 16 : i32
    %34 = vector.broadcast %c16_i32_14 : i32 to vector<16x1xi32>
    %35 = arith.cmpi slt, %33, %34 : vector<16x1xi32>
    %36 = arith.extui %35 : vector<16x1xi1> to vector<16x1xi32>
    %37 = arith.sitofp %36 : vector<16x1xi32> to vector<16x1xf32>
    %38 = vector.broadcast %37 : vector<16x1xf32> to vector<16x128xf32>
    %39 = arith.mulf %28, %38 : vector<16x128xf32>
    %cst_15 = arith.constant dense<0.000000e+00> : vector<128xf32>
    %40 = vector.multi_reduction <add>, %39, %cst_15 [0] : vector<16x128xf32> to vector<128xf32>
    %41 = vector.shape_cast %40 : vector<128xf32> to vector<1x128xf32>
    %c0_16 = arith.constant 0 : index
    %c0_17 = arith.constant 0 : index
    %c0_18 = arith.constant 0 : index
    %42 = vector.load %arg7[%c0_16, %c0_17, %c0_18] : memref<1x2x128xf32, #tpu.memory_space<vmem>>, vector<1x1x128xf32>
    %43 = vector.shape_cast %42 : vector<1x1x128xf32> to vector<1x128xf32>
    %44 = vector.shape_cast %41 : vector<1x128xf32> to vector<1x1x128xf32>
    tpu.vector_store %arg7[%c0_16, %c0_17, %c0_18], %44 {strides = array<i32>} : memref<1x2x128xf32, #tpu.memory_space<vmem>>, vector<1x1x128xf32>,
    %45 = arith.mulf %39, %28 : vector<16x128xf32>
    %cst_19 = arith.constant dense<0.000000e+00> : vector<128xf32>
    %46 = vector.multi_reduction <add>, %45, %cst_19 [0] : vector<16x128xf32> to vector<128xf32>
    %47 = vector.shape_cast %46 : vector<128xf32> to vector<1x128xf32>
    %c0_20 = arith.constant 0 : index
    %c1 = arith.constant 1 : index
    %c0_21 = arith.constant 0 : index
    %48 = vector.load %arg7[%c0_20, %c1, %c0_21] : memref<1x2x128xf32, #tpu.memory_space<vmem>>, vector<1x1x128xf32>
    %49 = vector.shape_cast %48 : vector<1x1x128xf32> to vector<1x128xf32>
    %50 = vector.shape_cast %47 : vector<1x128xf32> to vector<1x1x128xf32>
    tpu.vector_store %arg7[%c0_20, %c1, %c0_21], %50 {strides = array<i32>} : memref<1x2x128xf32, #tpu.memory_space<vmem>>, vector<1x1x128xf32>,
    return
  }
  func.func @transform_0(%arg0: i32) -> (i32, i32) {
    %c0_i32 = arith.constant 0 : i32
    %c0_i32_0 = arith.constant 0 : i32
    %c0_i32_1 = arith.constant 0 : i32
    return %c0_i32, %c0_i32_0 : i32, i32
  }
  func.func @transform_1(%arg0: i32) -> (i32, i32) {
    %c0_i32 = arith.constant 0 : i32
    %c0_i32_0 = arith.constant 0 : i32
    return %arg0, %c0_i32 : i32, i32
  }
  func.func @transform_2(%arg0: i32) -> (i32, i32) {
    %c0_i32 = arith.constant 0 : i32
    %c0_i32_0 = arith.constant 0 : i32
    %c0_i32_1 = arith.constant 0 : i32
    return %c0_i32, %c0_i32_0 : i32, i32
  }
  func.func @transform_3(%arg0: i32) -> (i32, i32) {
    %c0_i32 = arith.constant 0 : i32
    %c0_i32_0 = arith.constant 0 : i32
    %c0_i32_1 = arith.constant 0 : i32
    return %c0_i32, %c0_i32_0 : i32, i32
  }
  func.func @transform_4(%arg0: i32) -> (i32, i32) {
    %c0_i32 = arith.constant 0 : i32
    %c0_i32_0 = arith.constant 0 : i32
    return %arg0, %c0_i32 : i32, i32
  }
  func.func @transform_5(%arg0: i32) -> (i32, i32) {
    %c0_i32 = arith.constant 0 : i32
    %c0_i32_0 = arith.constant 0 : i32
    return %arg0, %c0_i32 : i32, i32
  }
  func.func @transform_6(%arg0: i32) -> (i32, i32, i32) {
    %c0_i32 = arith.constant 0 : i32
    %c0_i32_0 = arith.constant 0 : i32
    %c0_i32_1 = arith.constant 0 : i32
    return %arg0, %c0_i32, %c0_i32_0 : i32, i32, i32
  }
}

</mosaic_0001>

<bundles_post_ra>
// kernel: tpu_custom_call.1
= control target key start
LH: loop header
LB: loop body
LE: loop exit
PB: predicated region body
PF: predicated region fallthrough
CT: control target
= control target key end

     0   :  { %12 = vsyncpa [#allocation3], 0  ;;  %v295_v1 = vmov 0   ;;  %s383_s0 = inlined_call_operand.vmem [shape: bf16[16,128], index: 0, kind: input, shape index: {}]   ;;  %s384_s1 = inlined_call_operand.vmem [shape: f32[16,1], index: 1, kind: input, shape index: {}]   ;;  %s385_s2 = inlined_call_operand.vmem [shape: f32[1,16], index: 2, kind: input, shape index: {}]   ;;  %s386_s3 = inlined_call_operand.vmem [shape: f32[1,128], index: 3, kind: input, shape index: {}]   ;;  %s387_s4 = inlined_call_operand.vmem [shape: bf16[16,16], index: 4, kind: input, shape index: {}]   ;;  %s388_s5 = inlined_call_operand.hbm [shape: f32[16,128], index: 5, kind: output, shape index: {0}]   ;;  %s389_s6 = inlined_call_operand.hbm [shape: f32[1,2,128], index: 6, kind: output, shape index: {1}]  }
   0x1   :  { %v25_v0 = vld [vmem:[%s384_s1] sm:$0xff]  ;;  %237 = vset.pattern.permute.xlu0 %v295_v1 }
   0x2   :  { %30 = vperm.xlu0 %237, %v25_v0  }
   0x3   :  { %13 = vsyncpa [#allocation5], 0  ;;  %v26_v2 = vld [vmem:[%s384_s1 + $0x8] sm:$0xff]  ;;  %v218_v3 = vld [vmem:[%s387_s4] sm:$0xff]   ;;  %vm56_vm0 = vcmask 130048   ;;  %v296_v20 = vmov 0.0  }
   0x4   :  { %v213_v4 = vld [vmem:[%s385_s2] ss:$0 sm:$0xff]  ;;  %v219_v5 = vunpack.c.l.bf16 %v218_v3  ;;  %v220_v9 = vunpack.c.h.bf16 %v218_v3  ;;  %223 = vmatprep.subr.bf16.mxu0 %v296_v20  ;;  %vm297_vm1 = vmmov 0   ;;  %v298_v28 = vmov 16   ;;  %s299_s29 = smov [#allocation2]  }
   0x5   :  { %v240_v19 = vld [vmem:[%s383_s0] sm:$0xff]   ;;  %225 = vmatprep.mubr.msk.bf16.mxu0 %vm297_vm1, %v296_v20  ;;  %239 = vset.pattern.permute.xlu1 %v298_v28  ;;  %s188_s30 = sshll.u32 %s299_s29, 4  ;;  %s189_s30 = int_to_ptr.vmem [resolvable:$true] %s188_s30 }
   0x6   :  { %35 = vperm.xlu0 %237, %v26_v2   ;;  %224 = vmatpush3.bf16.msra.mxu0 %v240_v19  ;;  %v216_v35 = vld [vmem:[%s386_s3] ss:$0 sm:$0xff]  ;;  %s247_s7 = scalar_lea.vmem %s189_s30, 256  ;;  %p252_p1 = scmp.lt.s32.totalorder %s189_s30, %s189_s30 }
   0x7   :  { %p248_p0 = scmp.ne.s32.totalorder %s189_s30, %s247_s7  ;;  %p253_p2 = scmp.lt.s32.totalorder %s247_s7, %s247_s7 }
   0x9   :  { %p254_p3 = por %p253_p2, %p252_p1 }
   0xa   :  { %238 = vset.pattern.permute.xlu0 %v298_v28 }
   0xb   :  { %p255_p4 = pnand %p254_p3, %p248_p0 }
  0x81   :  { %v31_v6 = vpop.permute.xlu0 %30 }
  0x82   :  { %v44_v7 = vadd.f32 %v213_v4, %v31_v6 }
  0x84   :  { %v50_v8 = vadd.f32 %v219_v5, %v44_v7 }
  0x85   :  { %v36_v10 = vpop.permute.xlu0 %35 }
  0x86   :  { %v45_v11 = vadd.f32 %v213_v4, %v36_v10  ;;  %v52_v12 = vmul.f32 0.2, %v50_v8 }
  0x88   :  { %v51_v13 = vadd.f32 %v220_v9, %v45_v11  ;;  %v54_v14 = vmax.f32 %v50_v8, %v52_v12 }
  0x8a   :  { %v57_v15 = vsel %vm56_vm0, %v54_v14, -inf  ;;  %v53_v16 = vmul.f32 0.2, %v51_v13 }
  0x8b   :  { %58 = vmax.xlane.f32.xlu1 %v57_v15 }
  0x8c   :  { %v55_v17 = vmax.f32 %v51_v13, %v53_v16 }
  0x8e   :  { %v60_v18 = vsel %vm56_vm0, %v55_v17, -inf }
  0x8f   :  { %61 = vmax.xlane.f32.xlu1 %v60_v18 }
 0x118   :  { %v59_v21 = vpop.xlane.xlu1 %58 }
 0x119   :  { %v63_v23 = vsub.f32 %v54_v14, %v59_v21 }
 0x11c   :  { %v62_v22 = vpop.xlane.xlu1 %61 }
 0x11d   :  { %v64_v24 = vsub.f32 %v55_v17, %v62_v22 }
 0x11f   :  { %v65_v25 = vpack.c.bf16 %v64_v24, %v63_v23 }
 0x121   :  { %v67_v26 = vmul.bf16 1069105081, %v65_v25 }
 0x123   :  { %241 = vpow.bf16 %v67_v26 }
 0x12e   :  { %v242_v27 = vpop.eup %241 }
 0x12f   :  { %226 = vmatmul.mubr.msk.bf16.vlgmr.msra.gmra.mrb[0].mxu0 %vm56_vm0, %v242_v27 }
 0x202   :  { %v114_v29 = vpop.f32.mrb[0].mxu0 }
 0x203   :  { %243 = vrcp.f32 %v114_v29  ;;  %v227_v30 = vpop.f32.mrb[1].mxu0 }
 0x204   :  { %v117_v31 = vpop.f32.mrb[2].mxu0 }
 0x205   :  { %245 = vrcp.f32 %v117_v31  ;;  %v228_v32 = vpop.f32.mrb[3].mxu0 }
 0x20d   :  { %v244_v33 = vpop.eup %243 }
 0x20e   :  { %125 = vperm.xlu0 %238, %v244_v33  }
 0x20f   :  { %v246_v34 = vpop.eup %245 }
 0x210   :  { %130 = vperm.xlu1 %239, %v246_v34  }
 0x28d   :  { %v126_v36 = vpop.permute.xlu0 %125 }
 0x28e   :  { %v133_v37 = vmul.f32 %v126_v36, %v114_v29 }
 0x28f   :  { %v131_v38 = vpop.permute.xlu1 %130 }
 0x290   :  { %v142_v39 = vadd.f32 %v216_v35, %v133_v37  ;;  %v134_v40 = vmul.f32 %v131_v38, %v117_v31 }
 0x292   :  { %v144_v41 = vmul.f32 0.01, %v142_v39  ;;  %v143_v42 = vadd.f32 %v216_v35, %v134_v40 }
 0x294   :  { %v146_v43 = vmax.f32 %v142_v39, %v144_v41  ;;  %v145_v44 = vmul.f32 0.01, %v143_v42 }
 0x296   :  { %148 = vst [vmem:[#allocation2] sm:$0xff] %v146_v43  ;;  %v147_v45 = vmax.f32 %v143_v42, %v145_v44  ;;  %v173_v46 = vmul.f32 %v146_v43, %v146_v43 }
 0x298   :  { %v165_v47 = vadd.f32 %v147_v45, %v146_v43  ;;  %v174_v48 = vmul.f32 %v147_v45, %v147_v45  ;;  %149 = vst [vmem:[#allocation2 + $0x8] sm:$0xff] %v147_v45 }
 0x299   :  { %258 = shalt.err (!%p255_p4)
}
 0x29a   :  { %s259_s9 = scalar_lea.hbm %s388_s5, 256 }
 0x29b   :  { %p260_p5 = scmp.ne.s32.totalorder %s388_s5, %s259_s9  ;;  %p263_p6 = scmp.lt.u32.totalorder %s259_s9, %s388_s5 }
 0x29d   :  { %p265_p7 = pnand %p263_p6, %p260_p5 }
 0x29f   :  { %268 = shalt.err (!%p265_p7)
}
 0x2a0   :  { %s300_s14 = smov 128   ;;  %s301_s15 = smov 8   ;;  %v166_v49 = vrot.slane %v165_v47, 4  ;;  %v175_v50 = vadd.f32 %v174_v48, %v173_v46 }
 0x2a1   :  { %194 = dma.vmem_to_hbm [thread:$0]  %s189_s30, 256, %s388_s5, [#allocation3], %s300_s14, %s300_s14, %s301_s15  }
 0x2a2   :  { %v167_v51 = vadd.f32 %v166_v49, %v165_v47  ;;  %v176_v52 = vrot.slane %v175_v50, 4  ;;  %s302_s18 = smov [#allocation4]  }
 0x2a3   :  { %s201_s19 = sshll.u32 %s302_s18, 4  ;;  %s202_s19 = int_to_ptr.vmem [resolvable:$true] %s201_s19 }
 0x2a4   :  { %v168_v53 = vrot.slane %v167_v51, 2  ;;  %v177_v54 = vadd.f32 %v176_v52, %v175_v50  ;;  %s269_s20 = scalar_lea.vmem %s202_s19, 32  ;;  %p274_p9 = scmp.lt.s32.totalorder %s202_s19, %s202_s19 }
 0x2a5   :  { %p270_p8 = scmp.ne.s32.totalorder %s202_s19, %s269_s20  ;;  %p275_p10 = scmp.lt.s32.totalorder %s269_s20, %s269_s20 }
 0x2a6   :  { %v169_v55 = vadd.f32 %v168_v53, %v167_v51  ;;  %v178_v56 = vrot.slane %v177_v54, 2 }
 0x2a7   :  { %p276_p11 = por %p275_p10, %p274_p9 }
 0x2a8   :  { %v170_v57 = vrot.slane %v169_v55, 1  ;;  %v179_v58 = vadd.f32 %v178_v56, %v177_v54 }
 0x2a9   :  { %p277_p12 = pnand %p276_p11, %p270_p8 }
 0x2aa   :  { %v171_v59 = vadd.f32 %v170_v57, %v169_v55  ;;  %v180_v60 = vrot.slane %v179_v58, 1 }
 0x2ac   :  { %172 = vst [vmem:[#allocation4] sm:$0x1] %v171_v59  ;;  %v181_v61 = vadd.f32 %v180_v60, %v179_v58 }
 0x2ae   :  { %182 = vst [vmem:[#allocation4 + $0x1] sm:$0x1] %v181_v61 }
 0x2af   :  { %280 = shalt.err (!%p277_p12)
}
 0x2b0   :  { %s281_s22 = scalar_lea.hbm %s389_s6, 32 }
 0x2b1   :  { %p282_p13 = scmp.ne.s32.totalorder %s389_s6, %s281_s22  ;;  %p285_p0 = scmp.lt.u32.totalorder %s281_s22, %s389_s6 }
 0x2b3   :  { %p287_p1 = pnand %p285_p0, %p282_p13 }
 0x2b5   :  { %290 = shalt.err (!%p287_p1)
}
 0x2b6   :  { %204 = dma.vmem_to_hbm [thread:$0]  %s202_s19, 32, %s389_s6, [#allocation5]  }
 0x2b7   :  { %291 = dma.done.wait [#allocation3], 256  }
 0x2b8   :  { %292 = vsyncadd [#allocation3], 4294967040 }
 0x2b9   :  { %293 = dma.done.wait [#allocation5], 32  }
 0x2ba   :  { %294 = vsyncadd [#allocation5], 4294967264 }
 0x2bb   :  { %211 = vsyncpa [#allocation3], 1 }
 0x2bc   :  { %212 = vsyncpa [#allocation5], 1 }

</bundles_post_ra>
